<compile_context>
chip_gen: v5e
topology: v5e:2x2
jax: 0.10.0
libtpu: 0.0.40
codegen_flags: <defaults>
</compile_context>

<pallas_src>
import math
import functools

import jax
import jax.numpy as jnp
from jax import lax
from jax.experimental import pallas as pl
from jax.experimental.pallas import tpu as pltpu

# ----------------------------- config (small) -----------------------------
B = 2          # batch
T = 8          # sequence length (== block_size)
C = 32         # n_embd
N_HEAD = 4
HEAD_DIM = C // N_HEAD
LN_EPS = 1e-5
NEG_INF = -1e30


# ------------------------------ Pallas kernel ------------------------------
def block_kernel(n_head, head_dim, n_embd,
                 x_ref, mask_ref,
                 wqkv_ref, wp_ref, w1_ref, w2_ref, b_ref,
                 out_ref):
    x = x_ref[...]                                   # (N, C) f32, N = B*T rows
    c = n_embd
    hd = head_dim

    # unpack the packed bias vector: [bqkv (3C) | bp (C) | b1 (4C) | b2 (C)]
    bqkv = b_ref[:, 0:3 * c]                         # (1, 3C)
    bp = b_ref[:, 3 * c:4 * c]                       # (1, C)
    b1 = b_ref[:, 4 * c:8 * c]                       # (1, 4C)
    b2 = b_ref[:, 8 * c:9 * c]                       # (1, C)

    # ---- attention branch: x + attn(ln1(x)) ----
    # ln1 affine is folded into wqkv/bqkv; emit only the normalized value.
    mu = jnp.mean(x, axis=-1, keepdims=True)
    var = jnp.mean((x - mu) ** 2, axis=-1, keepdims=True)
    xn = (x - mu) * lax.rsqrt(var + LN_EPS)

    # fused QKV projection: one MXU push, bf16 operands, f32 accumulation.
    qkv = jnp.dot(xn.astype(jnp.bfloat16), wqkv_ref[...],
                  preferred_element_type=jnp.float32) + bqkv     # (N, 3C) f32
    qkv_bf = qkv.astype(jnp.bfloat16)                            # single cast

    # gather per-head slices into a leading batch dim: (nh, N, hd)
    q = jnp.stack([qkv_bf[:, h * hd:(h + 1) * hd]
                   for h in range(n_head)], axis=0)
    k = jnp.stack([qkv_bf[:, c + h * hd:c + (h + 1) * hd]
                   for h in range(n_head)], axis=0)
    v = jnp.stack([qkv_bf[:, 2 * c + h * hd:2 * c + (h + 1) * hd]
                   for h in range(n_head)], axis=0)

    # one batched QK^T over all heads (1/sqrt(hd) already folded into wq/bq).
    att = lax.dot_general(q, k, (((2,), (2,)), ((0,), (0,))),
                          preferred_element_type=jnp.float32)    # (nh, N, N)
    att = att + mask_ref[...][None, :, :]            # block-diagonal causal
    att = att - jnp.max(att, axis=-1, keepdims=True)
    p = jnp.exp(att)
    p = p * pl.reciprocal(jnp.sum(p, axis=-1, keepdims=True), approx=True)

    # one batched PV over all heads.
    y_h = lax.dot_general(p.astype(jnp.bfloat16), v,
                          (((2,), (1,)), ((0,), (0,))),
                          preferred_element_type=jnp.float32)    # (nh, N, hd)
    # head outputs stay in vregs; concat along lanes (no VMEM round-trip).
    y = jnp.concatenate([y_h[h] for h in range(n_head)], axis=-1)  # (N, C)

    y = jnp.dot(y.astype(jnp.bfloat16), wp_ref[...],
                preferred_element_type=jnp.float32) + bp
    x1 = x + y

    # ---- MLP branch: x1 + mlp(ln2(x1)); ln2 affine folded into w1/b1 ----
    mu2 = jnp.mean(x1, axis=-1, keepdims=True)
    var2 = jnp.mean((x1 - mu2) ** 2, axis=-1, keepdims=True)
    x1n = (x1 - mu2) * lax.rsqrt(var2 + LN_EPS)

    m = jnp.dot(x1n.astype(jnp.bfloat16), w1_ref[...],
                preferred_element_type=jnp.float32) + b1
    # exact erf-based GELU (matches torch.nn.functional.gelu default)
    m = 0.5 * m * (1.0 + lax.erf(m * (1.0 / math.sqrt(2.0))))
    m = jnp.dot(m.astype(jnp.bfloat16), w2_ref[...],
                preferred_element_type=jnp.float32) + b2

    out_ref[...] = x1 + m


# ------------------------- one-time parameter prep -------------------------
def prepare_block_params(params, b, t):
    """Fold scales / LN affines into weights, pack biases, build the mask.

    Runs once per parameter set (not per forward call).
    """
    c = params["wq"].shape[0]
    hd = c // N_HEAD
    scale = 1.0 / math.sqrt(hd)

    # fused QKV weight with the attention scale folded into the Q columns.
    wqkv = jnp.concatenate(
        [params["wq"] * scale, params["wk"], params["wv"]], axis=1)   # (C, 3C)
    bqkv = jnp.concatenate(
        [params["bq"] * scale, params["bk"], params["bv"]], axis=0)   # (3C,)

    # fold ln1 affine into wqkv/bqkv:  (xn*g + b) @ W + bias
    #   = xn @ (g[:,None]*W) + (b @ W + bias)
    wqkv_f = params["ln1_g"][:, None] * wqkv
    bqkv_f = params["ln1_b"] @ wqkv + bqkv

    # fold ln2 affine into w1/b1.
    w1_f = params["ln2_g"][:, None] * params["w1"]
    b1_f = params["ln2_b"] @ params["w1"] + params["b1"]

    # pack all bias vectors into one (1, 9C) f32 array.
    bvec = jnp.concatenate(
        [bqkv_f, params["bp"], b1_f, params["b2"]], axis=0
    ).astype(jnp.float32)[None, :]                                    # (1, 9C)

    # block-diagonal causal mask over the flattened B*T rows, as an additive
    # bias (built once here, outside the kernel and outside the forward call).
    n = b * t
    row = jnp.arange(n, dtype=jnp.int32)[:, None]
    col = jnp.arange(n, dtype=jnp.int32)[None, :]
    allowed = (row // t == col // t) & (row >= col)
    mask = jnp.where(allowed, 0.0, NEG_INF).astype(jnp.float32)       # (N, N)

    return {
        "wqkv": wqkv_f.astype(jnp.bfloat16),
        "wp": params["wp"].astype(jnp.bfloat16),
        "w1": w1_f.astype(jnp.bfloat16),
        "w2": params["w2"].astype(jnp.bfloat16),
        "bvec": bvec,
        "mask": mask,
    }


def block_forward(x, prep):
    """x: (B, T, C) float32 -> (B, T, C) float32."""
    b, t, c = x.shape
    n = b * t
    x2 = x.reshape(n, c)           # collapse batch into rows: one kernel call

    kernel = functools.partial(block_kernel, N_HEAD, HEAD_DIM, c)
    vmem = pltpu.MemorySpace.VMEM
    n_inputs = 7

    out = pl.pallas_call(
        kernel,
        out_shape=jax.ShapeDtypeStruct((n, c), jnp.float32),
        in_specs=[pl.BlockSpec(memory_space=vmem)] * n_inputs,
        out_specs=pl.BlockSpec(memory_space=vmem),
    )(x2, prep["mask"], prep["wqkv"], prep["wp"], prep["w1"], prep["w2"],
      prep["bvec"])
    return out.reshape(b, t, c)


# --------------------------- pure-JAX reference ---------------------------
def block_reference(x, p):
    def ln(h, g, bb):
        mu = jnp.mean(h, axis=-1, keepdims=True)
        var = jnp.mean((h - mu) ** 2, axis=-1, keepdims=True)
        return (h - mu) / jnp.sqrt(var + LN_EPS) * g + bb

    bsz, t, c = x.shape
    h = ln(x, p["ln1_g"], p["ln1_b"])
    q = h @ p["wq"] + p["bq"]
    k = h @ p["wk"] + p["bk"]
    v = h @ p["wv"] + p["bv"]
    q = q.reshape(bsz, t, N_HEAD, HEAD_DIM).transpose(0, 2, 1, 3)
    k = k.reshape(bsz, t, N_HEAD, HEAD_DIM).transpose(0, 2, 1, 3)
    v = v.reshape(bsz, t, N_HEAD, HEAD_DIM).transpose(0, 2, 1, 3)
    att = jnp.einsum("bhqd,bhkd->bhqk", q, k) / math.sqrt(HEAD_DIM)
    mask = jnp.tril(jnp.ones((t, t), dtype=bool))
    att = jnp.where(mask[None, None], att, -jnp.inf)
    att = jax.nn.softmax(att, axis=-1)
    y = jnp.einsum("bhqk,bhkd->bhqd", att, v)
    y = y.transpose(0, 2, 1, 3).reshape(bsz, t, c)
    y = y @ p["wp"] + p["bp"]
    x1 = x + y
    h2 = ln(x1, p["ln2_g"], p["ln2_b"])
    m = h2 @ p["w1"] + p["b1"]
    m = 0.5 * m * (1.0 + lax.erf(m / math.sqrt(2.0)))
    m = m @ p["w2"] + p["b2"]
    return x1 + m


# ---------------------------------- main -----------------------------------
def init_params(key):
    keys = jax.random.split(key, 10)
    std = 0.02
    # non-trivial LayerNorm affines so the weight-folding path is exercised.
    p = {
        "ln1_g": 1.0 + 0.1 * jax.random.normal(keys[6], (C,), jnp.float32),
        "ln1_b": 0.1 * jax.random.normal(keys[7], (C,), jnp.float32),
        "wq": std * jax.random.normal(keys[0], (C, C), jnp.float32),
        "bq": jnp.zeros((C,), jnp.float32),
        "wk": std * jax.random.normal(keys[1], (C, C), jnp.float32),
        "bk": jnp.zeros((C,), jnp.float32),
        "wv": std * jax.random.normal(keys[2], (C, C), jnp.float32),
        "bv": jnp.zeros((C,), jnp.float32),
        "wp": std * jax.random.normal(keys[3], (C, C), jnp.float32),
        "bp": jnp.zeros((C,), jnp.float32),
        "ln2_g": 1.0 + 0.1 * jax.random.normal(keys[8], (C,), jnp.float32),
        "ln2_b": 0.1 * jax.random.normal(keys[9], (C,), jnp.float32),
        "w1": std * jax.random.normal(keys[4], (C, 4 * C), jnp.float32),
        "b1": jnp.zeros((4 * C,), jnp.float32),
        "w2": std * jax.random.normal(keys[5], (4 * C, C), jnp.float32),
        "b2": jnp.zeros((C,), jnp.float32),
    }
    return p


if __name__ == "__main__":
    key = jax.random.PRNGKey(0)
    k_x, k_p = jax.random.split(key)
    x = jax.random.normal(k_x, (B, T, C), jnp.float32)
    params = init_params(k_p)

    prep = prepare_block_params(params, B, T)     # one-time weight/mask prep
    out = block_forward(x, prep)
    out = jax.block_until_ready(out)

    ref = block_reference(x, params)
    assert out.shape == (B, T, C)
    # bf16 MXU operands + approx reciprocal trade a small amount of precision.
    assert jnp.allclose(out, ref, rtol=2e-3, atol=2e-3), (
        "mismatch vs reference: max abs err "
        f"{float(jnp.max(jnp.abs(out - ref)))}")

    print("KERNEL_OK")
</pallas_src>

<mosaic_0001>
module attributes {stable_mosaic.version = 11 : i64} {
  func.func @block_kernel(%arg0: memref<16x32xf32, #tpu.memory_space<vmem>>, %arg1: memref<16x16xf32, #tpu.memory_space<vmem>>, %arg2: memref<32x96xbf16, #tpu.memory_space<vmem>>, %arg3: memref<32x32xbf16, #tpu.memory_space<vmem>>, %arg4: memref<32x128xbf16, #tpu.memory_space<vmem>>, %arg5: memref<128x32xbf16, #tpu.memory_space<vmem>>, %arg6: memref<1x288xf32, #tpu.memory_space<vmem>>, %arg7: memref<16x32xf32, #tpu.memory_space<vmem>>) attributes {dimension_semantics = [], scalar_prefetch = 0 : i64, scratch_operands = 0 : i64, tpu.core_type = #tpu.core_type<tc>} {
    %c0 = arith.constant 0 : index
    %c0_0 = arith.constant 0 : index
    %0 = vector.load %arg0[%c0, %c0_0] : memref<16x32xf32, #tpu.memory_space<vmem>>, vector<16x32xf32>
    %c0_1 = arith.constant 0 : index
    %c0_2 = arith.constant 0 : index
    %1 = vector.load %arg6[%c0_1, %c0_2] : memref<1x288xf32, #tpu.memory_space<vmem>>, vector<1x96xf32>
    %c0_3 = arith.constant 0 : index
    %c96 = arith.constant 96 : index
    %2 = vector.load %arg6[%c0_3, %c96] : memref<1x288xf32, #tpu.memory_space<vmem>>, vector<1x32xf32>
    %c0_4 = arith.constant 0 : index
    %c128 = arith.constant 128 : index
    %3 = vector.load %arg6[%c0_4, %c128] : memref<1x288xf32, #tpu.memory_space<vmem>>, vector<1x128xf32>
    %c0_5 = arith.constant 0 : index
    %c256 = arith.constant 256 : index
    %4 = vector.load %arg6[%c0_5, %c256] : memref<1x288xf32, #tpu.memory_space<vmem>>, vector<1x32xf32>
    %cst = arith.constant dense<0.000000e+00> : vector<16xf32>
    %5 = vector.multi_reduction <add>, %0, %cst [1] : vector<16x32xf32> to vector<16xf32>
    %6 = vector.shape_cast %5 : vector<16xf32> to vector<16x1xf32>
    %cst_6 = arith.constant 3.200000e+01 : f32
    %7 = vector.broadcast %cst_6 : f32 to vector<16x1xf32>
    %8 = arith.divf %6, %7 : vector<16x1xf32>
    %9 = vector.broadcast %8 : vector<16x1xf32> to vector<16x32xf32>
    %10 = arith.subf %0, %9 : vector<16x32xf32>
    %11 = arith.mulf %10, %10 : vector<16x32xf32>
    %cst_7 = arith.constant dense<0.000000e+00> : vector<16xf32>
    %12 = vector.multi_reduction <add>, %11, %cst_7 [1] : vector<16x32xf32> to vector<16xf32>
    %13 = vector.shape_cast %12 : vector<16xf32> to vector<16x1xf32>
    %cst_8 = arith.constant 3.200000e+01 : f32
    %14 = vector.broadcast %cst_8 : f32 to vector<16x1xf32>
    %15 = arith.divf %13, %14 : vector<16x1xf32>
    %16 = vector.broadcast %8 : vector<16x1xf32> to vector<16x32xf32>
    %17 = arith.subf %0, %16 : vector<16x32xf32>
    %cst_9 = arith.constant 9.99999974E-6 : f32
    %18 = vector.broadcast %cst_9 : f32 to vector<16x1xf32>
    %19 = arith.addf %15, %18 : vector<16x1xf32>
    %20 = math.rsqrt %19 : vector<16x1xf32>
    %21 = vector.broadcast %20 : vector<16x1xf32> to vector<16x32xf32>
    %22 = arith.mulf %17, %21 : vector<16x32xf32>
    %23 = arith.truncf %22 : vector<16x32xf32> to vector<16x32xbf16>
    %c0_10 = arith.constant 0 : index
    %c0_11 = arith.constant 0 : index
    %24 = vector.load %arg2[%c0_10, %c0_11] : memref<32x96xbf16, #tpu.memory_space<vmem>>, vector<32x96xbf16>
    %cst_12 = arith.constant dense<0.000000e+00> : vector<16x96xf32>
    %25 = tpu.matmul %23, %24, %cst_12 {dimension_numbers = #tpu.dot_dimension_numbers<[1], [0], [0], [1], [0, 0, 1, 1], [], []>} : vector<16x32xbf16>, vector<32x96xbf16>, vector<16x96xf32> -> vector<16x96xf32>
    %26 = vector.broadcast %1 : vector<1x96xf32> to vector<16x96xf32>
    %27 = arith.addf %25, %26 : vector<16x96xf32>
    %28 = arith.truncf %27 : vector<16x96xf32> to vector<16x96xbf16>
    %29 = vector.extract_strided_slice %28 {offsets = [0, 0], sizes = [16, 8], strides = [1, 1]} : vector<16x96xbf16> to vector<16x8xbf16>
    %30 = vector.extract_strided_slice %28 {offsets = [0, 8], sizes = [16, 8], strides = [1, 1]} : vector<16x96xbf16> to vector<16x8xbf16>
    %31 = vector.extract_strided_slice %28 {offsets = [0, 16], sizes = [16, 8], strides = [1, 1]} : vector<16x96xbf16> to vector<16x8xbf16>
    %32 = vector.extract_strided_slice %28 {offsets = [0, 24], sizes = [16, 8], strides = [1, 1]} : vector<16x96xbf16> to vector<16x8xbf16>
    %33 = vector.shape_cast %29 : vector<16x8xbf16> to vector<1x16x8xbf16>
    %34 = vector.shape_cast %30 : vector<16x8xbf16> to vector<1x16x8xbf16>
    %35 = vector.shape_cast %31 : vector<16x8xbf16> to vector<1x16x8xbf16>
    %36 = vector.shape_cast %32 : vector<16x8xbf16> to vector<1x16x8xbf16>
    %37 = tpu.concatenate %33, %34, %35, %36 in 0 : vector<1x16x8xbf16>, vector<1x16x8xbf16>, vector<1x16x8xbf16>, vector<1x16x8xbf16> -> vector<4x16x8xbf16>
    %38 = vector.extract_strided_slice %28 {offsets = [0, 32], sizes = [16, 8], strides = [1, 1]} : vector<16x96xbf16> to vector<16x8xbf16>
    %39 = vector.extract_strided_slice %28 {offsets = [0, 40], sizes = [16, 8], strides = [1, 1]} : vector<16x96xbf16> to vector<16x8xbf16>
    %40 = vector.extract_strided_slice %28 {offsets = [0, 48], sizes = [16, 8], strides = [1, 1]} : vector<16x96xbf16> to vector<16x8xbf16>
    %41 = vector.extract_strided_slice %28 {offsets = [0, 56], sizes = [16, 8], strides = [1, 1]} : vector<16x96xbf16> to vector<16x8xbf16>
    %42 = vector.shape_cast %38 : vector<16x8xbf16> to vector<1x16x8xbf16>
    %43 = vector.shape_cast %39 : vector<16x8xbf16> to vector<1x16x8xbf16>
    %44 = vector.shape_cast %40 : vector<16x8xbf16> to vector<1x16x8xbf16>
    %45 = vector.shape_cast %41 : vector<16x8xbf16> to vector<1x16x8xbf16>
    %46 = tpu.concatenate %42, %43, %44, %45 in 0 : vector<1x16x8xbf16>, vector<1x16x8xbf16>, vector<1x16x8xbf16>, vector<1x16x8xbf16> -> vector<4x16x8xbf16>
    %47 = vector.extract_strided_slice %28 {offsets = [0, 64], sizes = [16, 8], strides = [1, 1]} : vector<16x96xbf16> to vector<16x8xbf16>
    %48 = vector.extract_strided_slice %28 {offsets = [0, 72], sizes = [16, 8], strides = [1, 1]} : vector<16x96xbf16> to vector<16x8xbf16>
    %49 = vector.extract_strided_slice %28 {offsets = [0, 80], sizes = [16, 8], strides = [1, 1]} : vector<16x96xbf16> to vector<16x8xbf16>
    %50 = vector.extract_strided_slice %28 {offsets = [0, 88], sizes = [16, 8], strides = [1, 1]} : vector<16x96xbf16> to vector<16x8xbf16>
    %51 = vector.shape_cast %47 : vector<16x8xbf16> to vector<1x16x8xbf16>
    %52 = vector.shape_cast %48 : vector<16x8xbf16> to vector<1x16x8xbf16>
    %53 = vector.shape_cast %49 : vector<16x8xbf16> to vector<1x16x8xbf16>
    %54 = vector.shape_cast %50 : vector<16x8xbf16> to vector<1x16x8xbf16>
    %55 = tpu.concatenate %51, %52, %53, %54 in 0 : vector<1x16x8xbf16>, vector<1x16x8xbf16>, vector<1x16x8xbf16>, vector<1x16x8xbf16> -> vector<4x16x8xbf16>
    %cst_13 = arith.constant dense<0.000000e+00> : vector<4x16x16xf32>
    %56 = tpu.matmul %37, %46, %cst_13 {dimension_numbers = #tpu.dot_dimension_numbers<[2], [2], [1], [1], [0, 0, 0, 1, 1, 1], [0], [0]>} : vector<4x16x8xbf16>, vector<4x16x8xbf16>, vector<4x16x16xf32> -> vector<4x16x16xf32>
    %c0_14 = arith.constant 0 : index
    %c0_15 = arith.constant 0 : index
    %57 = vector.load %arg1[%c0_14, %c0_15] : memref<16x16xf32, #tpu.memory_space<vmem>>, vector<16x16xf32>
    %58 = vector.shape_cast %57 : vector<16x16xf32> to vector<1x16x16xf32>
    %59 = vector.broadcast %58 : vector<1x16x16xf32> to vector<4x16x16xf32>
    %60 = arith.addf %56, %59 : vector<4x16x16xf32>
    %cst_16 = arith.constant dense<0xFF800000> : vector<4x16xf32>
    %61 = vector.multi_reduction <maximumf>, %60, %cst_16 [2] : vector<4x16x16xf32> to vector<4x16xf32>
    %62 = vector.shape_cast %61 : vector<4x16xf32> to vector<4x16x1xf32>
    %63 = vector.broadcast %62 : vector<4x16x1xf32> to vector<4x16x16xf32>
    %64 = arith.subf %60, %63 : vector<4x16x16xf32>
    %65 = math.exp %64 : vector<4x16x16xf32>
    %cst_17 = arith.constant dense<0.000000e+00> : vector<4x16xf32>
    %66 = vector.multi_reduction <add>, %65, %cst_17 [2] : vector<4x16x16xf32> to vector<4x16xf32>
    %67 = vector.shape_cast %66 : vector<4x16xf32> to vector<4x16x1xf32>
    %68 = tpu.reciprocal %67 {approx = true} : vector<4x16x1xf32> -> vector<4x16x1xf32>
    %69 = vector.broadcast %68 : vector<4x16x1xf32> to vector<4x16x16xf32>
    %70 = arith.mulf %65, %69 : vector<4x16x16xf32>
    %71 = arith.truncf %70 : vector<4x16x16xf32> to vector<4x16x16xbf16>
    %cst_18 = arith.constant dense<0.000000e+00> : vector<4x16x8xf32>
    %72 = tpu.matmul %71, %55, %cst_18 {dimension_numbers = #tpu.dot_dimension_numbers<[2], [1], [1], [2], [0, 0, 0, 1, 1, 2], [0], [0]>} : vector<4x16x16xbf16>, vector<4x16x8xbf16>, vector<4x16x8xf32> -> vector<4x16x8xf32>
    %73 = vector.extract_strided_slice %72 {offsets = [0, 0, 0], sizes = [1, 16, 8], strides = [1, 1, 1]} : vector<4x16x8xf32> to vector<1x16x8xf32>
    %74 = vector.shape_cast %73 : vector<1x16x8xf32> to vector<16x8xf32>
    %75 = vector.extract_strided_slice %72 {offsets = [1, 0, 0], sizes = [1, 16, 8], strides = [1, 1, 1]} : vector<4x16x8xf32> to vector<1x16x8xf32>
    %76 = vector.shape_cast %75 : vector<1x16x8xf32> to vector<16x8xf32>
    %77 = vector.extract_strided_slice %72 {offsets = [2, 0, 0], sizes = [1, 16, 8], strides = [1, 1, 1]} : vector<4x16x8xf32> to vector<1x16x8xf32>
    %78 = vector.shape_cast %77 : vector<1x16x8xf32> to vector<16x8xf32>
    %79 = vector.extract_strided_slice %72 {offsets = [3, 0, 0], sizes = [1, 16, 8], strides = [1, 1, 1]} : vector<4x16x8xf32> to vector<1x16x8xf32>
    %80 = vector.shape_cast %79 : vector<1x16x8xf32> to vector<16x8xf32>
    %81 = tpu.concatenate %74, %76, %78, %80 in 1 : vector<16x8xf32>, vector<16x8xf32>, vector<16x8xf32>, vector<16x8xf32> -> vector<16x32xf32>
    %82 = arith.truncf %81 : vector<16x32xf32> to vector<16x32xbf16>
    %c0_19 = arith.constant 0 : index
    %c0_20 = arith.constant 0 : index
    %83 = vector.load %arg3[%c0_19, %c0_20] : memref<32x32xbf16, #tpu.memory_space<vmem>>, vector<32x32xbf16>
    %cst_21 = arith.constant dense<0.000000e+00> : vector<16x32xf32>
    %84 = tpu.matmul %82, %83, %cst_21 {dimension_numbers = #tpu.dot_dimension_numbers<[1], [0], [0], [1], [0, 0, 1, 1], [], []>} : vector<16x32xbf16>, vector<32x32xbf16>, vector<16x32xf32> -> vector<16x32xf32>
    %85 = vector.broadcast %2 : vector<1x32xf32> to vector<16x32xf32>
    %86 = arith.addf %84, %85 : vector<16x32xf32>
    %87 = arith.addf %0, %86 : vector<16x32xf32>
    %cst_22 = arith.constant dense<0.000000e+00> : vector<16xf32>
    %88 = vector.multi_reduction <add>, %87, %cst_22 [1] : vector<16x32xf32> to vector<16xf32>
    %89 = vector.shape_cast %88 : vector<16xf32> to vector<16x1xf32>
    %cst_23 = arith.constant 3.200000e+01 : f32
    %90 = vector.broadcast %cst_23 : f32 to vector<16x1xf32>
    %91 = arith.divf %89, %90 : vector<16x1xf32>
    %92 = vector.broadcast %91 : vector<16x1xf32> to vector<16x32xf32>
    %93 = arith.subf %87, %92 : vector<16x32xf32>
    %94 = arith.mulf %93, %93 : vector<16x32xf32>
    %cst_24 = arith.constant dense<0.000000e+00> : vector<16xf32>
    %95 = vector.multi_reduction <add>, %94, %cst_24 [1] : vector<16x32xf32> to vector<16xf32>
    %96 = vector.shape_cast %95 : vector<16xf32> to vector<16x1xf32>
    %cst_25 = arith.constant 3.200000e+01 : f32
    %97 = vector.broadcast %cst_25 : f32 to vector<16x1xf32>
    %98 = arith.divf %96, %97 : vector<16x1xf32>
    %99 = vector.broadcast %91 : vector<16x1xf32> to vector<16x32xf32>
    %100 = arith.subf %87, %99 : vector<16x32xf32>
    %cst_26 = arith.constant 9.99999974E-6 : f32
    %101 = vector.broadcast %cst_26 : f32 to vector<16x1xf32>
    %102 = arith.addf %98, %101 : vector<16x1xf32>
    %103 = math.rsqrt %102 : vector<16x1xf32>
    %104 = vector.broadcast %103 : vector<16x1xf32> to vector<16x32xf32>
    %105 = arith.mulf %100, %104 : vector<16x32xf32>
    %106 = arith.truncf %105 : vector<16x32xf32> to vector<16x32xbf16>
    %c0_27 = arith.constant 0 : index
    %c0_28 = arith.constant 0 : index
    %107 = vector.load %arg4[%c0_27, %c0_28] : memref<32x128xbf16, #tpu.memory_space<vmem>>, vector<32x128xbf16>
    %cst_29 = arith.constant dense<0.000000e+00> : vector<16x128xf32>
    %108 = tpu.matmul %106, %107, %cst_29 {dimension_numbers = #tpu.dot_dimension_numbers<[1], [0], [0], [1], [0, 0, 1, 1], [], []>} : vector<16x32xbf16>, vector<32x128xbf16>, vector<16x128xf32> -> vector<16x128xf32>
    %109 = vector.broadcast %3 : vector<1x128xf32> to vector<16x128xf32>
    %110 = arith.addf %108, %109 : vector<16x128xf32>
    %cst_30 = arith.constant 5.000000e-01 : f32
    %111 = vector.broadcast %cst_30 : f32 to vector<16x128xf32>
    %112 = arith.mulf %111, %110 : vector<16x128xf32>
    %cst_31 = arith.constant 0.707106769 : f32
    %113 = vector.broadcast %cst_31 : f32 to vector<16x128xf32>
    %114 = arith.mulf %110, %113 : vector<16x128xf32>
    %115 = math.erf %114 : vector<16x128xf32>
    %cst_32 = arith.constant 1.000000e+00 : f32
    %116 = vector.broadcast %cst_32 : f32 to vector<16x128xf32>
    %117 = arith.addf %116, %115 : vector<16x128xf32>
    %118 = arith.mulf %112, %117 : vector<16x128xf32>
    %119 = arith.truncf %118 : vector<16x128xf32> to vector<16x128xbf16>
    %c0_33 = arith.constant 0 : index
    %c0_34 = arith.constant 0 : index
    %120 = vector.load %arg5[%c0_33, %c0_34] : memref<128x32xbf16, #tpu.memory_space<vmem>>, vector<128x32xbf16>
    %cst_35 = arith.constant dense<0.000000e+00> : vector<16x32xf32>
    %121 = tpu.matmul %119, %120, %cst_35 {dimension_numbers = #tpu.dot_dimension_numbers<[1], [0], [0], [1], [0, 0, 1, 1], [], []>} : vector<16x128xbf16>, vector<128x32xbf16>, vector<16x32xf32> -> vector<16x32xf32>
    %122 = vector.broadcast %4 : vector<1x32xf32> to vector<16x32xf32>
    %123 = arith.addf %121, %122 : vector<16x32xf32>
    %124 = arith.addf %87, %123 : vector<16x32xf32>
    %c0_36 = arith.constant 0 : index
    %c0_37 = arith.constant 0 : index
    %125 = vector.load %arg7[%c0_36, %c0_37] : memref<16x32xf32, #tpu.memory_space<vmem>>, vector<16x32xf32>
    tpu.vector_store %arg7[%c0_36, %c0_37], %124 {strides = array<i32>} : memref<16x32xf32, #tpu.memory_space<vmem>>, vector<16x32xf32>,
    return
  }
}

</mosaic_0001>

<bundles_post_ra>
// kernel: tpu_custom_call.1
= control target key start
LH: loop header
LB: loop body
LE: loop exit
PB: predicated region body
PF: predicated region fallthrough
CT: control target
= control target key end

     0   :  { %vm33_vm0 = vcmask 261120   ;;  %s1220_s0 = inlined_call_operand.vmem [shape: f32[16,32], index: 0, kind: input, shape index: {}]   ;;  %s1221_s1 = inlined_call_operand.vmem [shape: f32[16,16], index: 1, kind: input, shape index: {}]   ;;  %s1222_s2 = inlined_call_operand.vmem [shape: bf16[32,96], index: 2, kind: input, shape index: {}]   ;;  %s1223_s3 = inlined_call_operand.vmem [shape: bf16[32,32], index: 3, kind: input, shape index: {}]   ;;  %s1224_s4 = inlined_call_operand.vmem [shape: bf16[32,128], index: 4, kind: input, shape index: {}]   ;;  %s1225_s5 = inlined_call_operand.vmem [shape: bf16[128,32], index: 5, kind: input, shape index: {}]   ;;  %s1226_s6 = inlined_call_operand.vmem [shape: f32[1,288], index: 6, kind: input, shape index: {}]   ;;  %s1227_s7 = inlined_call_operand.hbm [shape: f32[16,32], index: 7, kind: output, shape index: {}]  }
   0x1   :  { %v1021_v0 = vld [vmem:[%s1220_s0] sm:$0xff] }
   0x2   :  { %v34_v1 = vsel %vm33_vm0, %v1021_v0, 0.0 }
   0x3   :  { %35 = vadd.xlane.f32.xlu0 %v34_v1 }
   0x4   :  { %12 = vsyncpa [#allocation3], 0  ;;  %v1028_v2 = vld [vmem:[%s1220_s0 + $0x8] sm:$0xff]  ;;  %v966_v4 = vmov 32.0   ;;  %v850_v22 = vld [vmem:[%s1222_s2] sm:$0xff]  ;;  %s967_s9 = smov 112  }
   0x5   :  { %v37_v3 = vsel %vm33_vm0, %v1028_v2, 0.0  ;;  %894 = vrcp.f32 %v966_v4  ;;  %v851_v21 = vld [vmem:[%s1222_s2 + $0x8] sm:$0xff]  ;;  %v1052_v46 = vld [vmem:[%s1226_s6] ss:$0 sm:$0xff]  ;;  %s968_s10 = smov 120   ;;  %s969_s11 = smov 104  }
   0x6   :  { %114 = vmatpush.bf16.msra.mxu0 %v851_v21  ;;  %s970_s12 = smov 96   ;;  %vm145_vm8 = vcmask 64512   ;;  %vm241_vm9 = vcmask 130048   ;;  %s972_s17 = smov 8   ;;  %vm466_vm10 = vcmask 195584  }
   0x7   :  { %s973_s18 = smov 16   ;;  %s974_s19 = smov 24  }
   0x8   :  { %s975_s20 = smov 32   ;;  %s976_s21 = smov [#allocation2]  }
   0x9   :  { %s767_s22 = sshll.u32 %s976_s21, 4  ;;  %s768_s22 = int_to_ptr.vmem [resolvable:$true] %s767_s22 }
   0xa   :  { %115 = vmatpush.bf16.msra.mxu0 %v850_v22  ;;  %v139_v22 = vld [vmem:[%s1221_s1 + $0x8] sm:$0xff] }
   0xb   :  { %38 = vadd.xlane.f32.xlu0 %v37_v3  ;;  %v895_v5 = vpop.eup %894 }
   0xc   :  { %v41_v6 = vmul.f32 32.0, %v895_v5  ;;  %vm45_vm1 = vweird.f32 %v895_v5 }
   0xe   :  { %v42_v7 = vsub.f32 1.0, %v41_v6 }
  0x10   :  { %v43_v8 = vmul.f32 %v895_v5, %v42_v7 }
  0x12   :  { %v44_v9 = vadd.f32 %v895_v5, %v43_v8 }
  0x14   :  { %v1032_v10 = vsel %vm45_vm1, %v895_v5, %v44_v9 }
  0x76   :  { %v36_v11 = vpop.xlane.xlu0 %35 }
  0x77   :  { %v47_v12 = vmul.f32 %v1032_v10, %v36_v11 }
  0x79   :  { %v49_v13 = vsub.f32 %v1021_v0, %v47_v12 }
  0x7b   :  { %v51_v14 = vmul.f32 %v49_v13, %v49_v13 }
  0x7d   :  { %v53_v15 = vsel %vm33_vm0, %v51_v14, 0.0 }
  0x7e   :  { %54 = vadd.xlane.f32.xlu1 %v53_v15  ;;  %v39_v16 = vpop.xlane.xlu0 %38 }
  0x7f   :  { %v48_v17 = vmul.f32 %v1032_v10, %v39_v16 }
  0x81   :  { %v50_v18 = vsub.f32 %v1028_v2, %v48_v17 }
  0x83   :  { %v52_v19 = vmul.f32 %v50_v18, %v50_v18 }
  0x85   :  { %v56_v20 = vsel %vm33_vm0, %v52_v19, 0.0 }
  0x86   :  { %57 = vadd.xlane.f32.xlu1 %v56_v20 }
  0xf1   :  { %v55_v23 = vpop.xlane.xlu1 %54 }
  0xf2   :  { %v59_v24 = vmul.f32 %v55_v23, %v1032_v10 }
  0xf4   :  { %v61_v25 = vadd.f32 1e-05, %v59_v24 }
  0xf6   :  { %896 = vrsqrt.f32 %v61_v25  ;;  %vm69_vm3 = vweird.f32 %v61_v25 }
  0xf9   :  { %v58_v26 = vpop.xlane.xlu1 %57 }
  0xfa   :  { %v60_v27 = vmul.f32 %v58_v26, %v1032_v10 }
  0xfc   :  { %v897_v28 = vpop.eup %896  ;;  %v62_v29 = vadd.f32 1e-05, %v60_v27 }
  0xfd   :  { %v64_v30 = vmul.f32 %v897_v28, %v61_v25  ;;  %vm70_vm2 = vweird.f32 %v897_v28 }
  0xfe   :  { %898 = vrsqrt.f32 %v62_v29  ;;  %vm71_vm5 = vmor %vm69_vm3, %vm70_vm2  ;;  %vm79_vm6 = vweird.f32 %v62_v29 }
  0xff   :  { %v65_v31 = vmul.f32 %v897_v28, %v64_v30 }
 0x101   :  { %v66_v32 = vmul.f32 0.5, %v65_v31 }
 0x103   :  { %v67_v34 = vsub.f32 1.5, %v66_v32 }
 0x104   :  { %v899_v33 = vpop.eup %898 }
 0x105   :  { %v74_v35 = vmul.f32 %v899_v33, %v62_v29  ;;  %v68_v37 = vmul.f32 %v897_v28, %v67_v34  ;;  %vm80_vm4 = vweird.f32 %v899_v33 }
 0x106   :  { %vm81_vm7 = vmor %vm79_vm6, %vm80_vm4 }
 0x107   :  { %v75_v36 = vmul.f32 %v899_v33, %v74_v35  ;;  %v72_v41 = vsel %vm71_vm5, %v897_v28, %v68_v37 }
 0x108   :  { %v83_v43 = vmul.f32 %v72_v41, %v49_v13 }
 0x109   :  { %v76_v38 = vmul.f32 0.5, %v75_v36 }
 0x10b   :  { %v77_v39 = vsub.f32 1.5, %v76_v38 }
 0x10d   :  { %v78_v40 = vmul.f32 %v899_v33, %v77_v39 }
 0x10f   :  { %v82_v42 = vsel %vm81_vm7, %v899_v33, %v78_v40 }
 0x110   :  { %v84_v44 = vmul.f32 %v82_v42, %v50_v18  ;;  %v138_v18 = vld [vmem:[%s1221_s1] sm:$0xff]  ;;  %s971_s1 = smov 64  }
 0x112   :  { %v85_v45 = vpack.c.bf16 %v84_v44, %v83_v43 }
 0x114   :  { %789 = vmatmul.msk.bf16.vlgmr.msra.gmra.mxu0 %vm33_vm0, %v85_v45 }
 0x191   :  { %v117_v47 = vpop.f32.mrf.mxu0 }
 0x192   :  { %v118_v48 = vadd.f32 %v1052_v46, %v117_v47 }
 0x194   :  { %v122_v49 = vpack.c.bf16 %v118_v48, %v118_v48 }
 0x196   :  { %130 = vrot.lane.b32.xlu0 %v122_v49, %s967_s9  ;;  %126 = vrot.lane.b32.xlu2 %v122_v49, %s968_s10  ;;  %v140_v54 = vunpack.c.l.b16 %v122_v49 }
 0x199   :  { %v119_v50 = vpop.f32.mrf.mxu0 }
 0x19a   :  { %v120_v51 = vadd.f32 %v1052_v46, %v119_v50 }
 0x19c   :  { %v123_v52 = vpack.c.bf16 %v120_v51, %v120_v51 }
 0x19e   :  { %132 = vrot.lane.b32.xlu1 %v123_v52, %s967_s9  ;;  %128 = vrot.lane.b32.xlu2 %v123_v52, %s968_s10  ;;  %v141_v53 = vunpack.c.l.b16 %v123_v52 }
 0x1a0   :  { %v1056_v55 = vpack.c.b16 %v141_v53, %v140_v54 }
 0x1a6   :  { %134 = vrot.lane.b32.xlu2 %v122_v49, %s969_s11  ;;  %143 = vrot.lane.b32.xlu1 %v1056_v55, %s970_s12 }
 0x1ae   :  { %136 = vrot.lane.b32.xlu2 %v123_v52, %s969_s11 }
 0x1f0   :  { %v127_v56 = vpop.permute.xlu2 %126 }
 0x1f1   :  { %v166_v58 = vunpack.c.l.b16 %v127_v56 }
 0x1f8   :  { %v129_v57 = vpop.permute.xlu2 %128 }
 0x1f9   :  { %v167_v59 = vunpack.c.l.b16 %v129_v57 }
 0x1fb   :  { %v1059_v60 = vpack.c.b16 %v167_v59, %v166_v58 }
 0x1fd   :  { %169 = vrot.lane.b32.xlu2 %v1059_v60, %s970_s12 }
 0x200   :  { %v135_v61 = vpop.permute.xlu2 %134 }
 0x201   :  { %v216_v63 = vunpack.c.l.b16 %v135_v61 }
 0x208   :  { %v137_v62 = vpop.permute.xlu2 %136  ;;  %v131_v4 = vpop.permute.xlu0 %130 }
 0x209   :  { %v217_v1 = vunpack.c.l.b16 %v137_v62  ;;  %v191_v6 = vunpack.c.l.b16 %v131_v4 }
 0x20b   :  { %v1062_v3 = vpack.c.b16 %v217_v1, %v216_v63 }
 0x20d   :  { %219 = vrot.lane.b32.xlu2 %v1062_v3, %s970_s12 }
 0x210   :  { %v133_v5 = vpop.permute.xlu1 %132 }
 0x211   :  { %v192_v7 = vunpack.c.l.b16 %v133_v5 }
 0x213   :  { %v1065_v8 = vpack.c.b16 %v192_v7, %v191_v6 }
 0x215   :  { %194 = vrot.lane.b32.xlu0 %v1065_v8, %s970_s12 }
 0x218   :  { %v144_v9 = vpop.permute.xlu1 %143 }
 0x219   :  { %v150_v11 = vsel %vm145_vm8, %v144_v9, 0 }
 0x21a   :  { %159 = vmatpush.bf16.xpose.msra.mxu1 %v150_v11 }
 0x221   :  { %790 = vmatmul.msk.bf16.vlgmr.msra.gmra.mxu1 %vm145_vm8, %v1056_v55 }
 0x257   :  { %v170_v12 = vpop.permute.xlu2 %169 }
 0x258   :  { %v175_v13 = vsel %vm145_vm8, %v170_v12, 0 }
 0x259   :  { %184 = vmatpush.bf16.xpose.msra.mxu2 %v175_v13 }
 0x260   :  { %791 = vmatmul.msk.bf16.vlgmr.msra.gmra.mxu2 %vm145_vm8, %v1059_v60 }
 0x267   :  { %v220_v14 = vpop.permute.xlu2 %219 }
 0x268   :  { %v225_v15 = vsel %vm145_vm8, %v220_v14, 0 }
 0x269   :  { %234 = vmatpush.bf16.xpose.msrb.mxu0 %v225_v15 }
 0x270   :  { %793 = vmatmul.msk.bf16.vlgmr.msrb.gmra.mxu0 %vm145_vm8, %v1062_v3 }
 0x287   :  { %v195_v16 = vpop.permute.xlu0 %194 }
 0x288   :  { %v200_v17 = vsel %vm145_vm8, %v195_v16, 0 }
 0x289   :  { %209 = vmatpush.bf16.xpose.msra.mxu3 %v200_v17 }
 0x290   :  { %792 = vmatmul.msk.bf16.vlgmr.msra.gmra.mxu3 %vm145_vm8, %v1065_v8 }
 0x29e   :  { %v161_v25 = vpop.f32.mrf.mxu1 }
 0x29f   :  { %v162_v42 = vadd.f32 %v161_v25, %v138_v18 }
 0x2a1   :  { %v242_v43 = vsel %vm241_vm9, %v162_v42, -inf }
 0x2a6   :  { %v163_v30 = vpop.f32.mrf.mxu1 }
 0x2a7   :  { %v1089_v31 = vadd.f32 %v163_v30, %v139_v22 }
 0x2a9   :  { %v245_v32 = vsel %vm241_vm9, %v1089_v31, -inf }
 0x2e3   :  { %v186_v19 = vpop.f32.mrf.mxu2 }
 0x2e4   :  { %v187_v20 = vadd.f32 %v186_v19, %v138_v18 }
 0x2e6   :  { %v248_v21 = vsel %vm241_vm9, %v187_v20, -inf }
 0x2e7   :  { %249 = vmax.xlane.f32.xlu0 %v248_v21 }
 0x2eb   :  { %v188_v23 = vpop.f32.mrf.mxu2 }
 0x2ec   :  { %v189_v24 = vadd.f32 %v188_v23, %v139_v22 }
 0x2ed   :  { %v236_v27 = vpop.f32.mrf.mxu0 }
 0x2ee   :  { %v251_v26 = vsel %vm241_vm9, %v189_v24, -inf  ;;  %v237_v28 = vadd.f32 %v236_v27, %v138_v18 }
 0x2ef   :  { %252 = vmax.xlane.f32.xlu2 %v251_v26 }
 0x2f0   :  { %v260_v29 = vsel %vm241_vm9, %v237_v28, -inf }
 0x2f5   :  { %v238_v36 = vpop.f32.mrf.mxu0 }
 0x2f6   :  { %v239_v37 = vadd.f32 %v238_v36, %v139_v22 }
 0x2f7   :  { %261 = vmax.xlane.f32.xlu2 %v260_v29 }
 0x2f8   :  { %v263_v41 = vsel %vm241_vm9, %v239_v37, -inf }
 0x2ff   :  { %246 = vmax.xlane.f32.xlu2 %v245_v32 }
 0x313   :  { %v211_v33 = vpop.f32.mrf.mxu3 }
 0x314   :  { %v212_v34 = vadd.f32 %v211_v33, %v138_v18 }
 0x316   :  { %v254_v35 = vsel %vm241_vm9, %v212_v34, -inf }
 0x317   :  { %255 = vmax.xlane.f32.xlu1 %v254_v35 }
 0x31b   :  { %v213_v38 = vpop.f32.mrf.mxu3 }
 0x31c   :  { %v214_v39 = vadd.f32 %v213_v38, %v139_v22 }
 0x31e   :  { %v257_v40 = vsel %vm241_vm9, %v214_v39, -inf }
 0x31f   :  { %258 = vmax.xlane.f32.xlu0 %v257_v40  ;;  %264 = vmax.xlane.f32.xlu1 %v263_v41 }
 0x327   :  { %243 = vmax.xlane.f32.xlu0 %v242_v43 }
 0x35a   :  { %v250_v44 = vpop.xlane.xlu0 %249 }
 0x35b   :  { %v268_v45 = vsub.f32 %v187_v20, %v250_v44 }
 0x35d   :  { %v278_v47 = vmul.f32 1.442695, %v268_v45 }
 0x35f   :  { %900 = vpow2.f32 %v278_v47 }
 0x362   :  { %v253_v48 = vpop.xlane.xlu2 %252 }
 0x363   :  { %v269_v53 = vsub.f32 %v189_v24, %v253_v48 }
 0x365   :  { %v1097_v49 = vpop.eup %900  ;;  %v280_v56 = vmul.f32 1.442695, %v269_v53 }
 0x366   :  { %v296_v50 = vsel %vm241_vm9, %v1097_v49, 0.0 }
 0x367   :  { %297 = vadd.xlane.f32.xlu1 %v296_v50 }
 0x36a   :  { %v262_v51 = vpop.xlane.xlu2 %261 }
 0x36b   :  { %v272_v52 = vsub.f32 %v237_v28, %v262_v51 }
 0x36d   :  { %v286_v54 = vmul.f32 1.442695, %v272_v52 }
 0x36f   :  { %902 = vpow2.f32 %v286_v54 }
 0x370   :  { %904 = vpow2.f32 %v280_v56 }
 0x372   :  { %v247_v22 = vpop.xlane.xlu2 %246 }
 0x373   :  { %v267_v23 = vsub.f32 %v1089_v31, %v247_v22 }
 0x375   :  { %v903_v57 = vpop.eup %902  ;;  %v276_v24 = vmul.f32 1.442695, %v267_v23 }
 0x376   :  { %v308_v58 = vsel %vm241_vm9, %v903_v57, 0.0  ;;  %v1102_v59 = vpop.eup %904 }
 0x377   :  { %309 = vadd.xlane.f32.xlu0 %v308_v58  ;;  %v299_v61 = vsel %vm241_vm9, %v1102_v59, 0.0 }
 0x37f   :  { %300 = vadd.xlane.f32.xlu0 %v299_v61 }
 0x38a   :  { %v256_v62 = vpop.xlane.xlu1 %255 }
 0x38b   :  { %v270_v63 = vsub.f32 %v212_v34, %v256_v62 }
 0x38d   :  { %v282_v1 = vmul.f32 1.442695, %v270_v63 }
 0x38f   :  { %906 = vpow2.f32 %v282_v1 }
 0x392   :  { %v259_v4 = vpop.xlane.xlu0 %258  ;;  %v265_v5 = vpop.xlane.xlu1 %264 }
 0x393   :  { %v271_v6 = vsub.f32 %v214_v39, %v259_v4  ;;  %v273_v7 = vsub.f32 %v239_v37, %v265_v5  ;;  %393 = vrot.lane.b32.xlu0 %v1065_v8, %s971_s1 }
 0x395   :  { %v907_v9 = vpop.eup %906  ;;  %v284_v11 = vmul.f32 1.442695, %v271_v6  ;;  %v288_v12 = vmul.f32 1.442695, %v273_v7 }
 0x396   :  { %v302_v13 = vsel %vm241_vm9, %v907_v9, 0.0 }
 0x397   :  { %908 = vpow2.f32 %v284_v11  ;;  %303 = vadd.xlane.f32.xlu2 %v302_v13 }
 0x398   :  { %910 = vpow2.f32 %v288_v12 }
 0x39a   :  { %v244_v18 = vpop.xlane.xlu0 %243 }
 0x39b   :  { %v266_v19 = vsub.f32 %v162_v42, %v244_v18 }
 0x39d   :  { %v909_v14 = vpop.eup %908  ;;  %v274_v20 = vmul.f32 1.442695, %v266_v19 }
 0x39e   :  { %v911_v15 = vpop.eup %910  ;;  %v305_v16 = vsel %vm241_vm9, %v909_v14, 0.0 }
 0x39f   :  { %306 = vadd.xlane.f32.xlu1 %v305_v16  ;;  %v311_v17 = vsel %vm241_vm9, %v911_v15, 0.0  ;;  %912 = vpow2.f32 %v274_v20 }
 0x3a0   :  { %312 = vadd.xlane.f32.xlu2 %v311_v17  ;;  %914 = vpow2.f32 %v276_v24  ;;  %v853_v24 = vld [vmem:[%s1223_s3 + $0x8] sm:$0xff] }
 0x3a5   :  { %v1112_v8 = vpop.eup %912 }
 0x3a6   :  { %v290_v21 = vsel %vm241_vm9, %v1112_v8, 0.0  ;;  %v915_v25 = vpop.eup %914 }
 0x3a7   :  { %v293_v26 = vsel %vm241_vm9, %v915_v25, 0.0 }
 0x3b8   :  { %418 = vrot.lane.b32.xlu2 %v1062_v3, %s971_s1  ;;  %368 = vrot.lane.b32.xlu1 %v1059_v60, %s971_s1 }
 0x3bd   :  { %291 = vadd.xlane.f32.xlu0 %v290_v21 }
 0x3c0   :  { %343 = vrot.lane.b32.xlu2 %v1056_v55, %s971_s1 }
 0x3da   :  { %v298_v28 = vpop.xlane.xlu1 %297 }
 0x3e2   :  { %294 = vadd.xlane.f32.xlu1 %v293_v26 }
 0x3ea   :  { %v310_v3 = vpop.xlane.xlu0 %309 }
 0x3f2   :  { %v301_v27 = vpop.xlane.xlu0 %300 }
 0x405   :  { %v394_v60 = vpop.permute.xlu0 %393 }
 0x406   :  { %406 = vmatpush.bf16.msrb.mxu3 %v394_v60 }
 0x40a   :  { %v304_v29 = vpop.xlane.xlu2 %303 }
 0x40b   :  { %916 = vrcp.f32 %v304_v29 }
 0x40c   :  { %918 = vrcp.f32 %v310_v3 }
 0x411   :  { %v917_v32 = vpop.eup %916 }
 0x412   :  { %v307_v30 = vpop.xlane.xlu1 %306  ;;  %v919_v33 = vpop.eup %918  ;;  %v326_v31 = vmul.f32 %v917_v32, %v907_v9 }
 0x413   :  { %v313_v55 = vpop.xlane.xlu2 %312  ;;  %920 = vrcp.f32 %v307_v30  ;;  %v328_v34 = vmul.f32 %v919_v33, %v903_v57 }
 0x414   :  { %922 = vrcp.f32 %v313_v55  ;;  %v334_v37 = vpack.c.bf16 %v326_v31, %v326_v31 }
 0x415   :  { %924 = vrcp.f32 %v301_v27  ;;  %v336_v39 = vpack.c.bf16 %v328_v34, %v328_v34 }
 0x416   :  { %926 = vrcp.f32 %v298_v28  ;;  %v390_v45 = vunpack.c.l.b16 %v334_v37 }
 0x417   :  { %v415_v50 = vunpack.c.l.b16 %v336_v39 }
 0x419   :  { %v921_v35 = vpop.eup %920 }
 0x41a   :  { %v923_v36 = vpop.eup %922  ;;  %v327_v38 = vmul.f32 %v921_v35, %v909_v14 }
 0x41b   :  { %v329_v40 = vmul.f32 %v923_v36, %v911_v15  ;;  %v419_v41 = vpop.permute.xlu2 %418  ;;  %v925_v43 = vpop.eup %924 }
 0x41c   :  { %v335_v42 = vpack.c.bf16 %v327_v38, %v327_v38  ;;  %431 = vmatpush.bf16.msra.mxu0 %v419_v41  ;;  %v927_v48 = vpop.eup %926  ;;  %v325_v52 = vmul.f32 %v925_v43, %v1102_v59 }
 0x41d   :  { %v337_v44 = vpack.c.bf16 %v329_v40, %v329_v40  ;;  %v324_v56 = vmul.f32 %v927_v48, %v1097_v49 }
 0x41e   :  { %v391_v47 = vunpack.c.l.b16 %v335_v42  ;;  %v333_v58 = vpack.c.bf16 %v325_v52, %v325_v52 }
 0x41f   :  { %v416_v51 = vunpack.c.l.b16 %v337_v44  ;;  %v332_v61 = vpack.c.bf16 %v324_v56, %v324_v56 }
 0x420   :  { %v392_v53 = vpack.c.b16 %v391_v47, %v390_v45  ;;  %v366_v62 = vunpack.c.l.b16 %v333_v58 }
 0x421   :  { %v417_v54 = vpack.c.b16 %v416_v51, %v415_v50  ;;  %v365_v63 = vunpack.c.l.b16 %v332_v61 }
 0x422   :  { %796 = vmatmul.msk.bf16.vlgmr.msrb.gmra.mxu3 %vm241_vm9, %v392_v53 }
 0x423   :  { %797 = vmatmul.msk.bf16.vlgmr.msra.gmra.mxu0 %vm241_vm9, %v417_v54  ;;  %v344_v57 = vpop.permute.xlu2 %343  ;;  %v367_v4 = vpack.c.b16 %v366_v62, %v365_v63  ;;  %v855_v62 = vld [vmem:[%s1224_s4 + $0x8] sm:$0xff]  ;;  %v854_v63 = vld [vmem:[%s1224_s4] sm:$0xff] }
 0x424   :  { %356 = vmatpush.bf16.msrb.mxu1 %v344_v57 }
 0x428   :  { %498 = vmatpush.bf16.msra.mxu1 %v853_v24  ;;  %v892_v24 = vld [vmem:[%s1226_s6 + $0x1] ss:$0 sm:$0xff] }
 0x42a   :  { %v369_v1 = vpop.permute.xlu1 %368 }
 0x42b   :  { %381 = vmatpush.bf16.msrb.mxu2 %v369_v1 }
 0x42e   :  { %795 = vmatmul.msk.bf16.vlgmr.msrb.gmra.mxu2 %vm241_vm9, %v367_v4 }
 0x42f   :  { %581 = vmatpush.bf16.msra.mxu2 %v855_v62 }
 0x430   :  { %v292_v59 = vpop.xlane.xlu0 %291 }
 0x431   :  { %928 = vrcp.f32 %v292_v59 }
 0x433   :  { %582 = vmatpush.bf16.msra.mxu2 %v854_v63 }
 0x437   :  { %v929_v6 = vpop.eup %928 }
 0x438   :  { %v322_v49 = vmul.f32 %v929_v6, %v1112_v8 }
 0x43a   :  { %v330_v9 = vpack.c.bf16 %v322_v49, %v322_v49 }
 0x43c   :  { %v340_v13 = vunpack.c.l.b16 %v330_v9 }
 0x455   :  { %v295_v5 = vpop.xlane.xlu1 %294 }
 0x456   :  { %930 = vrcp.f32 %v295_v5 }
 0x45c   :  { %v931_v7 = vpop.eup %930 }
 0x45d   :  { %v323_v11 = vmul.f32 %v931_v7, %v915_v25  ;;  %v852_v25 = vld [vmem:[%s1223_s3] sm:$0xff]  ;;  %s769_s3 = sshll.u32 %s1227_s7, 4  ;;  %s770_s3 = int_to_ptr.hbm [resolvable:$true] %s769_s3 }
 0x45e   :  { %499 = vmatpush.bf16.msra.mxu1 %v852_v25 }
 0x45f   :  { %v331_v12 = vpack.c.bf16 %v323_v11, %v323_v11 }
 0x461   :  { %v341_v14 = vunpack.c.l.b16 %v331_v12 }
 0x463   :  { %v342_v15 = vpack.c.b16 %v341_v14, %v340_v13 }
 0x465   :  { %794 = vmatmul.msk.bf16.vlgmr.msrb.gmra.mxu1 %vm241_vm9, %v342_v15 }
 0x4a0   :  { %v433_v20 = vpop.f32.mrf.mxu0 }
 0x4a5   :  { %v408_v17 = vpop.f32.mrf.mxu3 }
 0x4a8   :  { %v435_v8 = vpop.f32.mrf.mxu0 }
 0x4a9   :  { %v886_v23 = vpack.i.bf16 %v435_v8, %v433_v20 }
 0x4ad   :  { %v410_v21 = vpop.f32.mrf.mxu3 }
 0x4ae   :  { %v881_v22 = vpack.i.bf16 %v410_v21, %v408_v17 }
 0x4b1   :  { %v383_v16 = vpop.f32.mrf.mxu2 }
 0x4b9   :  { %v385_v18 = vpop.f32.mrf.mxu2 }
 0x4ba   :  { %v876_v19 = vpack.i.bf16 %v385_v18, %v383_v16 }
 0x4bc   :  { %877 = vrot.lane.b32.xlu2 %v876_v19, %s972_s17 }
 0x4c4   :  { %882 = vrot.lane.b32.xlu2 %v881_v22, %s973_s18 }
 0x4cc   :  { %887 = vrot.lane.b32.xlu2 %v886_v23, %s974_s19 }
 0x4d4   :  { %486 = vrot.lane.b32.xlu2 %v1052_v46, %s975_s20 }
 0x4e2   :  { %v358_v3 = vpop.f32.mrf.mxu1 }
 0x4ea   :  { %v360_v32 = vpop.f32.mrf.mxu1 }
 0x516   :  { %v878_v26 = vpop.permute.xlu2 %877 }
 0x517   :  { %v880_v60 = vunpack.i.h.bf16 %v878_v26  ;;  %v879_v28 = vunpack.i.l.bf16 %v878_v26 }
 0x519   :  { %v462_v55 = vsel %vm145_vm8, %v358_v3, %v879_v28  ;;  %v463_v33 = vsel %vm145_vm8, %v360_v32, %v880_v60  ;;  %v863_v3 = vld [vmem:[%s1225_s5 + $0x38] sm:$0xff]  ;;  %v862_v28 = vld [vmem:[%s1225_s5 + $0x30] sm:$0xff] }
 0x51a   :  { %745 = vmatpush.bf16.msra.mxu3 %v863_v3 }
 0x51e   :  { %v883_v27 = vpop.permute.xlu2 %882  ;;  %746 = vmatpush.bf16.msra.mxu3 %v862_v28 }
 0x51f   :  { %v885_v29 = vunpack.i.h.bf16 %v883_v27  ;;  %v884_v30 = vunpack.i.l.bf16 %v883_v27 }
 0x521   :  { %v464_v35 = vsel %vm241_vm9, %v462_v55, %v884_v30  ;;  %v465_v36 = vsel %vm241_vm9, %v463_v33, %v885_v29  ;;  %v861_v33 = vld [vmem:[%s1225_s5 + $0x28] sm:$0xff] }
 0x522   :  { %747 = vmatpush.bf16.msra.mxu3 %v861_v33 }
 0x526   :  { %v888_v46 = vpop.permute.xlu2 %887 }
 0x527   :  { %v890_v31 = vunpack.i.h.bf16 %v888_v46  ;;  %v889_v34 = vunpack.i.l.bf16 %v888_v46 }
 0x529   :  { %v467_v37 = vsel %vm466_vm10, %v464_v35, %v889_v34  ;;  %v468_v38 = vsel %vm466_vm10, %v465_v36, %v890_v31 }
 0x52a   :  { %v469_v39 = vpack.c.bf16 %v468_v38, %v467_v37  ;;  %v860_v37 = vld [vmem:[%s1225_s5 + $0x20] sm:$0xff] }
 0x52b   :  { %748 = vmatpush.bf16.msra.mxu3 %v860_v37 }
 0x52c   :  { %806 = vmatmul.msk.bf16.vlgmr.msra.gmra.mxu1 %vm33_vm0, %v469_v39 }
 0x52e   :  { %v487_v40 = vpop.permute.xlu2 %486 }
 0x5a9   :  { %v501_v41 = vpop.f32.mrf.mxu1 }
 0x5aa   :  { %v502_v42 = vadd.f32 %v501_v41, %v487_v40 }
 0x5ac   :  { %v1140_v43 = vadd.f32 %v502_v42, %v1021_v0 }
 0x5ae   :  { %v508_v44 = vsel %vm33_vm0, %v1140_v43, 0.0 }
 0x5af   :  { %509 = vadd.xlane.f32.xlu0 %v508_v44  ;;  %v859_v44 = vld [vmem:[%s1225_s5 + $0x18] sm:$0xff] }
 0x5b0   :  { %749 = vmatpush.bf16.msra.mxu3 %v859_v44 }
 0x5b1   :  { %v503_v45 = vpop.f32.mrf.mxu1 }
 0x5b2   :  { %v504_v47 = vadd.f32 %v503_v45, %v487_v40 }
 0x5b4   :  { %v1145_v48 = vadd.f32 %v504_v47, %v1028_v2 }
 0x5b6   :  { %v511_v50 = vsel %vm33_vm0, %v1145_v48, 0.0 }
 0x5b7   :  { %512 = vadd.xlane.f32.xlu1 %v511_v50 }
 0x622   :  { %v510_v51 = vpop.xlane.xlu0 %509 }
 0x623   :  { %v514_v52 = vmul.f32 %v510_v51, %v1032_v10 }
 0x625   :  { %v516_v53 = vsub.f32 %v1140_v43, %v514_v52 }
 0x627   :  { %v518_v0 = vmul.f32 %v516_v53, %v516_v53 }
 0x629   :  { %v520_v54 = vsel %vm33_vm0, %v518_v0, 0.0 }
 0x62a   :  { %v513_v56 = vpop.xlane.xlu1 %512  ;;  %521 = vadd.xlane.f32.xlu2 %v520_v54  ;;  %v858_v54 = vld [vmem:[%s1225_s5 + $0x10] sm:$0xff] }
 0x62b   :  { %v515_v57 = vmul.f32 %v513_v56, %v1032_v10  ;;  %750 = vmatpush.bf16.msra.mxu3 %v858_v54 }
 0x62d   :  { %v517_v58 = vsub.f32 %v1145_v48, %v515_v57 }
 0x62f   :  { %v519_v2 = vmul.f32 %v517_v58, %v517_v58 }
 0x631   :  { %v523_v61 = vsel %vm33_vm0, %v519_v2, 0.0 }
 0x632   :  { %524 = vadd.xlane.f32.xlu0 %v523_v61 }
 0x69d   :  { %v522_v1 = vpop.xlane.xlu2 %521 }
 0x69e   :  { %v526_v4 = vmul.f32 %v522_v1, %v1032_v10  ;;  %v857_v1 = vld [vmem:[%s1225_s5 + $0x8] sm:$0xff] }
 0x69f   :  { %751 = vmatpush.bf16.msra.mxu3 %v857_v1 }
 0x6a0   :  { %v528_v59 = vadd.f32 1e-05, %v526_v4 }
 0x6a2   :  { %932 = vrsqrt.f32 %v528_v59  ;;  %vm536_vm12 = vweird.f32 %v528_v59 }
 0x6a5   :  { %v525_v5 = vpop.xlane.xlu0 %524 }
 0x6a6   :  { %v527_v6 = vmul.f32 %v525_v5, %v1032_v10 }
 0x6a8   :  { %v933_v49 = vpop.eup %932  ;;  %v529_v7 = vadd.f32 1e-05, %v527_v6 }
 0x6a9   :  { %v531_v9 = vmul.f32 %v933_v49, %v528_v59  ;;  %vm537_vm11 = vweird.f32 %v933_v49 }
 0x6aa   :  { %934 = vrsqrt.f32 %v529_v7  ;;  %vm538_vm14 = vmor %vm536_vm12, %vm537_vm11  ;;  %vm546_vm15 = vweird.f32 %v529_v7 }
 0x6ab   :  { %v532_v11 = vmul.f32 %v933_v49, %v531_v9 }
 0x6ad   :  { %v533_v12 = vmul.f32 0.5, %v532_v11 }
 0x6af   :  { %v534_v14 = vsub.f32 1.5, %v533_v12 }
 0x6b0   :  { %v935_v13 = vpop.eup %934 }
 0x6b1   :  { %v541_v15 = vmul.f32 %v935_v13, %v529_v7  ;;  %v535_v17 = vmul.f32 %v933_v49, %v534_v14  ;;  %vm547_vm13 = vweird.f32 %v935_v13  ;;  %v856_v7 = vld [vmem:[%s1225_s5] sm:$0xff] }
 0x6b2   :  { %vm548_vm1 = vmor %vm546_vm15, %vm547_vm13  ;;  %752 = vmatpush.bf16.msra.mxu3 %v856_v7 }
 0x6b3   :  { %v542_v16 = vmul.f32 %v935_v13, %v541_v15  ;;  %v539_v20 = vsel %vm538_vm14, %v933_v49, %v535_v17 }
 0x6b4   :  { %v550_v22 = vmul.f32 %v539_v20, %v516_v53 }
 0x6b5   :  { %v543_v18 = vmul.f32 0.5, %v542_v16 }
 0x6b7   :  { %v544_v19 = vsub.f32 1.5, %v543_v18 }
 0x6b9   :  { %v545_v21 = vmul.f32 %v935_v13, %v544_v19 }
 0x6bb   :  { %v549_v10 = vsel %vm548_vm1, %v935_v13, %v545_v21 }
 0x6bc   :  { %v551_v8 = vmul.f32 %v549_v10, %v517_v58 }
 0x6be   :  { %v552_v23 = vpack.c.bf16 %v551_v8, %v550_v22 }
 0x6c0   :  { %815 = vmatmul.msk.bf16.vlgmr.msra.gmra.mxu2 %vm33_vm0, %v552_v23 }
 0x743   :  { %v584_v25 = vpop.f32.mrf.mxu2 }
 0x744   :  { %v1167_v26 = vadd.f32 %v892_v24, %v584_v25 }
 0x746   :  { %v1173_v27 = vmul.f32 0.70710677, %v1167_v26 }
 0x748   :  { %v593_v60 = vmul.f32 %v1173_v27, %v1173_v27 }
 0x74a   :  { %v594_v29 = vmin.f32 %v593_v60, 16.0 }
 0x74b   :  { %v586_v30 = vpop.f32.mrf.mxu2 }
 0x74c   :  { %v595_v32 = vmul.f32 2.1237322e-06, %v594_v29  ;;  %v606_v46 = vmul.f32 3.8918573e-05, %v594_v29  ;;  %v1180_v55 = vadd.f32 %v892_v24, %v586_v30 }
 0x74e   :  { %v596_v31 = vadd.f32 0.00028619796, %v595_v32  ;;  %v607_v34 = vadd.f32 0.001143296, %v606_v46  ;;  %v1186_v35 = vmul.f32 0.70710677, %v1180_v55 }
 0x750   :  { %v608_v36 = vmul.f32 %v607_v34, %v594_v29  ;;  %v633_v38 = vmul.f32 %v1186_v35, %v1186_v35  ;;  %v597_v39 = vmul.f32 %v596_v31, %v594_v29 }
 0x752   :  { %v609_v40 = vadd.f32 0.014752088, %v608_v36  ;;  %v634_v41 = vmin.f32 %v633_v38, 16.0  ;;  %v598_v50 = vadd.f32 0.0036580483, %v597_v39 }
 0x754   :  { %v610_v42 = vmul.f32 %v609_v40, %v594_v29  ;;  %v635_v45 = vmul.f32 2.1237322e-06, %v634_v41  ;;  %v646_v47 = vmul.f32 3.8918573e-05, %v634_v41  ;;  %v599_v58 = vmul.f32 %v598_v50, %v594_v29 }
 0x756   :  { %v611_v51 = vadd.f32 0.112945676, %v610_v42  ;;  %v636_v52 = vadd.f32 0.00028619796, %v635_v45  ;;  %v647_v53 = vadd.f32 0.001143296, %v646_v47 }
 0x757   :  { %v600_v59 = vadd.f32 0.05243302, %v599_v58 }
 0x758   :  { %v612_v0 = vmul.f32 %v611_v51, %v594_v29  ;;  %v637_v56 = vmul.f32 %v636_v52, %v634_v41  ;;  %v648_v57 = vmul.f32 %v647_v53, %v634_v41  ;;  %v589_v51 = vmul.f32 0.5, %v1167_v26 }
 0x759   :  { %v601_v11 = vmul.f32 %v600_v59, %v594_v29  ;;  %v590_v52 = vmul.f32 0.5, %v1180_v55 }
 0x75a   :  { %v613_v2 = vadd.f32 0.4994258, %v612_v0  ;;  %v638_v61 = vadd.f32 0.0036580483, %v637_v56  ;;  %v649_v62 = vadd.f32 0.014752088, %v648_v57 }
 0x75b   :  { %v602_v16 = vadd.f32 0.18741608, %v601_v11  ;;  %v893_v57 = vld [vmem:[%s1226_s6 + $0x2] ss:$0 sm:$0xff]  ;;  %s977_s6 = smov 128  }
 0x75c   :  { %v614_v63 = vmul.f32 %v613_v2, %v594_v29  ;;  %v650_v4 = vmul.f32 %v649_v62, %v634_v41  ;;  %v639_v6 = vmul.f32 %v638_v61, %v634_v41 }
 0x75d   :  { %v603_v21 = vmul.f32 %v602_v16, %v594_v29 }
 0x75e   :  { %v615_v5 = vadd.f32 1.0, %v614_v63  ;;  %v651_v49 = vadd.f32 0.112945676, %v650_v4  ;;  %v640_v12 = vadd.f32 0.05243302, %v639_v6 }
 0x75f   :  { %v604_v25 = vadd.f32 1.1283791, %v603_v21 }
 0x760   :  { %936 = vrcp.f32 %v615_v5  ;;  %v652_v9 = vmul.f32 %v651_v49, %v634_v41  ;;  %v641_v18 = vmul.f32 %v640_v12, %v634_v41  ;;  %v627_v22 = vand.u32 2147483648, %v615_v5 }
 0x761   :  { %v625_v23 = vand.u32 2147483647, %v615_v5  ;;  %vm621_vm3 = vweird.f32 %v615_v5  ;;  %v605_v33 = vmul.f32 %v604_v25, %v1173_v27 }
 0x762   :  { %v653_v13 = vadd.f32 0.4994258, %v652_v9  ;;  %v642_v8 = vadd.f32 0.18741608, %v641_v18  ;;  %v628_v28 = vor.u32 1.1754944e-38, %v627_v22 }
 0x763   :  { %vm626_vm5 = vcmp.eq.f32.partialorder %v625_v23, 8.507059e+37 }
 0x764   :  { %v654_v14 = vmul.f32 %v653_v13, %v634_v41  ;;  %v643_v30 = vmul.f32 %v642_v8, %v634_v41 }
 0x766   :  { %v937_v15 = vpop.eup %936  ;;  %v655_v19 = vadd.f32 1.0, %v654_v14  ;;  %v644_v29 = vadd.f32 1.1283791, %v643_v30 }
 0x767   :  { %v617_v17 = vmul.f32 %v937_v15, %v615_v5  ;;  %vm622_vm2 = vweird.f32 %v937_v15 }
 0x768   :  { %938 = vrcp.f32 %v655_v19  ;;  %vm623_vm4 = vmor %vm621_vm3, %vm622_vm2  ;;  %v667_v34 = vand.u32 2147483648, %v655_v19  ;;  %v665_v38 = vand.u32 2147483647, %v655_v19  ;;  %vm661_vm7 = vweird.f32 %v655_v19 }
 0x769   :  { %v618_v20 = vsub.f32 1.0, %v617_v17  ;;  %v645_v44 = vmul.f32 %v644_v29, %v1186_v35 }
 0x76a   :  { %v668_v40 = vor.u32 1.1754944e-38, %v667_v34  ;;  %vm666_vm9 = vcmp.eq.f32.partialorder %v665_v38, 8.507059e+37 }
 0x76b   :  { %v619_v10 = vmul.f32 %v937_v15, %v618_v20 }
 0x76d   :  { %v620_v24 = vadd.f32 %v937_v15, %v619_v10 }
 0x76e   :  { %v939_v3 = vpop.eup %938 }
 0x76f   :  { %v624_v60 = vsel %vm623_vm4, %v937_v15, %v620_v24  ;;  %v657_v32 = vmul.f32 %v939_v3, %v655_v19  ;;  %vm662_vm6 = vweird.f32 %v939_v3 }
 0x770   :  { %v629_v46 = vsel %vm626_vm5, %v628_v28, %v624_v60  ;;  %vm663_vm8 = vmor %vm661_vm7, %vm662_vm6 }
 0x771   :  { %v658_v31 = vsub.f32 1.0, %v657_v32  ;;  %v630_v36 = vmul.f32 %v629_v46, %v605_v33 }
 0x773   :  { %v659_v37 = vmul.f32 %v939_v3, %v658_v31  ;;  %v816_v42 = vclamps-f32 %v630_v36, 1.0 }
 0x775   :  { %v660_v39 = vadd.f32 %v939_v3, %v659_v37  ;;  %v673_v50 = vadd.f32 1.0, %v816_v42 }
 0x777   :  { %v664_v41 = vsel %vm663_vm8, %v939_v3, %v660_v39  ;;  %v675_v0 = vmul.f32 %v673_v50, %v589_v51 }
 0x778   :  { %v669_v45 = vsel %vm666_vm9, %v668_v40, %v664_v41 }
 0x779   :  { %v670_v47 = vmul.f32 %v669_v45, %v645_v44 }
 0x77b   :  { %v817_v27 = vclamps-f32 %v670_v47, 1.0 }
 0x77d   :  { %v674_v53 = vadd.f32 1.0, %v817_v27 }
 0x77f   :  { %v676_v54 = vmul.f32 %v674_v53, %v590_v52 }
 0x781   :  { %v677_v56 = vpack.c.bf16 %v676_v54, %v675_v0 }
 0x783   :  { %753 = vmatmul.bf16.vlgmr.msra.gmra.mxu3 %v677_v56 }
 0x806   :  { %v754_v35 = vpop.f32.mrf.mxu3 }
 0x807   :  { %v755_v58 = vadd.f32 %v893_v57, %v754_v35 }
 0x809   :  { %v759_v2 = vadd.f32 %v755_v58, %v1140_v43 }
 0x80b   :  { %761 = vst.msk [vmem:[#allocation2] sm:$0xff] %vm33_vm0, %v759_v2 }
 0x80e   :  { %v756_v26 = vpop.f32.mrf.mxu3 }
 0x80f   :  { %v757_v55 = vadd.f32 %v893_v57, %v756_v26 }
 0x811   :  { %v760_v61 = vadd.f32 %v757_v55, %v1145_v48 }
 0x813   :  { %762 = vst.msk [vmem:[#allocation2 + $0x8] sm:$0xff] %vm33_vm0, %v760_v61 }
 0x814   :  { %775 = dma.vmem_to_hbm [thread:$0]  %s768_s22, 256, %s770_s3, [#allocation3], %s977_s6, %s977_s6, %s972_s17  }
 0x815   :  { %964 = dma.done.wait [#allocation3], 256  }
 0x816   :  { %965 = vsyncadd [#allocation3], 4294967040 }
 0x817   :  { %780 = vsyncpa [#allocation3], 1 }

</bundles_post_ra>
